<compile_context>
chip_gen: v7x
topology: tpu7x:2x2x1
jax: 0.10.0
libtpu: 0.0.40
codegen_flags: <defaults>
</compile_context>

<pallas_src>
import jax
import jax.numpy as jnp
from jax.experimental import pallas as pl
from jax.experimental.pallas import tpu as pltpu

_SMALL_BYTES = 1 << 20        # below this, a plain XLA copy beats kernel launch cost
_CHUNK_BYTES = 8 << 20        # chunk the DMA (concurrent copies) above this size
_MAX_CHUNKS = 4


def _make_dma_copy_kernel(chunk_bounds):
    """HBM->HBM copy: start all chunk DMAs, then wait on all of them."""
    def kernel(src_ref, dst_ref, sems):
        copies = []
        if len(chunk_bounds) == 1:
            cp = pltpu.make_async_copy(src_ref, dst_ref, sems.at[0])
            cp.start()
            copies.append(cp)
        else:
            for i, (start, size) in enumerate(chunk_bounds):
                cp = pltpu.make_async_copy(
                    src_ref.at[pl.ds(start, size)],
                    dst_ref.at[pl.ds(start, size)],
                    sems.at[i],
                )
                cp.start()
                copies.append(cp)
        for cp in copies:
            cp.wait()
    return kernel


def _chunk_bounds(shape, total_bytes):
    """Static chunking along the leading axis for concurrently-issued DMAs."""
    if total_bytes < _CHUNK_BYTES or len(shape) == 0 or shape[0] < 2:
        return [(0, shape[0] if shape else 1)]
    n = min(shape[0], _MAX_CHUNKS)
    base, rem = divmod(shape[0], n)
    bounds, start = [], 0
    for i in range(n):
        size = base + (1 if i < rem else 0)
        bounds.append((start, size))
        start += size
    return bounds


def poison_batch2_forward(poison: jax.Array, *, materialize: bool = False,
                          min_pallas_bytes: int = _SMALL_BYTES) -> jax.Array:
    """Equivalent of PoisonBatch2.forward(): returns the poison parameter.

    materialize=False (default): zero-copy identity — forward() is a pure
                                 pass-through, so no HBM traffic is needed.
    materialize=True           : produce a fresh buffer.  Tiny inputs use a
                                 plain XLA copy; larger inputs use an
                                 HBM->HBM DMA Pallas kernel.
    """
    if not materialize:
        return poison

    dtype = poison.dtype
    itemsize = jnp.dtype(dtype).itemsize
    total_bytes = poison.size * itemsize

    # Small-input fast path: kernel launch overhead would dominate.
    if total_bytes < min_pallas_bytes:
        return jnp.copy(poison)

    bounds = _chunk_bounds(poison.shape, total_bytes)
    kernel = _make_dma_copy_kernel(bounds)

    return pl.pallas_call(
        kernel,
        out_shape=jax.ShapeDtypeStruct(poison.shape, dtype),
        in_specs=[pl.BlockSpec(memory_space=pl.ANY)],
        out_specs=pl.BlockSpec(memory_space=pl.ANY),
        scratch_shapes=[pltpu.SemaphoreType.DMA((len(bounds),))],
        compiler_params=pltpu.CompilerParams(has_side_effects=True),
        cost_estimate=pl.CostEstimate(
            flops=0,
            transcendentals=0,
            bytes_accessed=2 * total_bytes,   # true bytes: one read + one write
        ),
    )(poison)


if __name__ == "__main__":
    key = jax.random.PRNGKey(0)

    # PoisonBatch2.__init__: poison = base_batch.clone()  (parameter init)
    N, C, H, W = 2, 4, 16, 16
    base_batch = jax.random.normal(key, (N, C, H, W), dtype=jnp.float32)
    poison_param = base_batch

    # Default production path: zero-copy identity (no kernel, no HBM traffic).
    fast = poison_batch2_forward(poison_param)
    assert fast is poison_param  # eager call: same buffer, zero traffic

    # Materialized path, forcing the Pallas DMA kernel (min_pallas_bytes=0).
    out = poison_batch2_forward(poison_param, materialize=True, min_pallas_bytes=0)
    out = jax.block_until_ready(out)
    assert out.shape == (N, C, H, W)
    assert out.dtype == poison_param.dtype
    assert bool(jnp.array_equal(out, poison_param))

    # Ragged / non-multiple-of-1024 size: no padding, no slicing — DMA copies
    # the true shape end-to-end.
    odd = jax.random.normal(jax.random.PRNGKey(1), (3, 3, 7, 5), dtype=jnp.float32)
    out_odd = poison_batch2_forward(odd, materialize=True, min_pallas_bytes=0)
    out_odd = jax.block_until_ready(out_odd)
    assert bool(jnp.array_equal(out_odd, odd))

    print("KERNEL_OK")
</pallas_src>

<mosaic_0001>
module attributes {stable_mosaic.version = 11 : i64} {
  func.func @kernel(%arg0: memref<2x4x16x16xf32, #tpu.memory_space<any>>, %arg1: memref<2x4x16x16xf32, #tpu.memory_space<any>>, %arg2: memref<1x!tpu.dma_semaphore, #tpu.memory_space<semaphore_mem>>) attributes {dimension_semantics = [], scalar_prefetch = 0 : i64, scratch_operands = 1 : i64, tpu.core_type = #tpu.core_type<tc>} {
    %c0_i32 = arith.constant 0 : i32
    %0 = tpu.memref_slice %arg2[%c0_i32] : memref<1x!tpu.dma_semaphore, #tpu.memory_space<semaphore_mem>> -> memref<1x!tpu.dma_semaphore, #tpu.memory_space<semaphore_mem>>
    %1 = tpu.memref_squeeze %0 : memref<1x!tpu.dma_semaphore, #tpu.memory_space<semaphore_mem>> -> memref<!tpu.dma_semaphore, #tpu.memory_space<semaphore_mem>>
    tpu.enqueue_dma source(%arg0 : memref<2x4x16x16xf32, #tpu.memory_space<any>>) target(%arg1 : memref<2x4x16x16xf32, #tpu.memory_space<any>>) target_semaphore(%1 : memref<!tpu.dma_semaphore, #tpu.memory_space<semaphore_mem>>)
    %c0_i32_0 = arith.constant 0 : i32
    %2 = tpu.memref_slice %arg2[%c0_i32_0] : memref<1x!tpu.dma_semaphore, #tpu.memory_space<semaphore_mem>> -> memref<1x!tpu.dma_semaphore, #tpu.memory_space<semaphore_mem>>
    %3 = tpu.memref_squeeze %2 : memref<1x!tpu.dma_semaphore, #tpu.memory_space<semaphore_mem>> -> memref<!tpu.dma_semaphore, #tpu.memory_space<semaphore_mem>>
    tpu.wait_dma2 semaphore(%3 : memref<!tpu.dma_semaphore, #tpu.memory_space<semaphore_mem>>) src(%arg0 : memref<2x4x16x16xf32, #tpu.memory_space<any>>) dst(%arg1 : memref<2x4x16x16xf32, #tpu.memory_space<any>>)
    return
  }
}

</mosaic_0001>

<bundles_post_ra>
// kernel: tpu_custom_call.1
= control target key start
LH: loop header
LB: loop body
LE: loop exit
PB: predicated region body
PF: predicated region fallthrough
CT: control target
= control target key end

     0   :  { %s36_s6 = smov [#allocation2]   ;;  %s37_s7 = smov [#allocation3]   ;;  %s55_s0 = inlined_call_operand.hbm [shape: f32[2,4,16,16], index: 0, kind: input, shape index: {}]   ;;  %s56_s1 = inlined_call_operand.hbm [shape: f32[2,4,16,16], index: 1, kind: output, shape index: {}]  }
   0x1   :  { %s38_s8 = smov 0  }
   0x2   :  { %18 = dma.general %s55_s0, 2048, %s56_s1, %s36_s6, %s37_s7, [#allocation4], %s38_s8, 0  }
   0x3   :  { %34 = dma.done.wait [#allocation2], 2048 }
   0x4   :  { %35 = vsyncadd [#allocation2], 4294965248 }
   0x5   :  { %24 = vsyncmov [#allocation2] }
   0x8   :  { %s25_s13 = vpop.sfrf %24 }
   0x9   :  { %p30_p0 = scmp.ne.s32.totalorder %s25_s13, 0 }
   0xb   :  { %29 = shalt.err (%p30_p0)  }

</bundles_post_ra>
